<compile_context>
chip_gen: v7x
topology: tpu7x:2x2x1
jax: 0.10.0
libtpu: 0.0.40
codegen_flags: <defaults>
</compile_context>

<pallas_src>
import functools

import jax
import jax.numpy as jnp
from jax.experimental import pallas as pl
from jax.experimental.pallas import tpu as pltpu


def _mha_fused_kernel(x_ref, wqkv_ref, wproj_ref, bproj_ref, o_ref,
                      *, batch, seq, n_heads, head_size):
    # x_ref    : (B*T, C)          whole (flattened) batch
    # wqkv_ref : (C, H*3*HS)       resident; per-head [k | q*scale | v]
    # wproj_ref: (H*HS, C)         resident
    # bproj_ref: (1, C)            resident
    # o_ref    : (B*T, C)          output slab
    x = x_ref[...]                                                   # (B*T, C)

    # Single fused projection for K, Q (pre-scaled), V of all heads.
    qkv = jnp.dot(x, wqkv_ref[...],
                  preferred_element_type=jnp.float32)                # (B*T, 3*H*HS)

    # Causal mask, computed once and reused by every (batch, head).
    row = jax.lax.broadcasted_iota(jnp.int32, (seq, seq), 0)
    col = jax.lax.broadcasted_iota(jnp.int32, (seq, seq), 1)
    causal = row >= col

    wproj = wproj_ref[...]                                           # (H*HS, C)
    bias = bproj_ref[...]                                            # (1, C)
    n_embed = wproj.shape[1]

    batch_outs = []
    for b in range(batch):                        # static loop, B is tiny
        qkv_b = qkv[b * seq:(b + 1) * seq, :]     # (T, 3*H*HS), sublane-aligned
        out_b = jnp.broadcast_to(bias, (seq, n_embed))   # bias seeds accumulator
        for h in range(n_heads):                  # static loop, H is small
            base = 3 * head_size * h              # per-head contiguous [k|q|v]
            k = qkv_b[:, base:base + head_size]
            q = qkv_b[:, base + head_size:base + 2 * head_size]
            v = qkv_b[:, base + 2 * head_size:base + 3 * head_size]

            # wei = k @ q^T (1/sqrt(C) pre-folded into the Q weights);
            # dot_general contracts directly -> no q.T relayout.
            wei = jax.lax.dot_general(
                k, q, dimension_numbers=(((1,), (1,)), ((), ())),
                preferred_element_type=jnp.float32)                  # (T, T)
            wei = jnp.where(causal, wei, -jnp.inf)

            # softmax over last axis, kept in f32.
            m = jnp.max(wei, axis=-1, keepdims=True)
            e = jnp.exp(wei - m)
            s = jnp.sum(e, axis=-1, keepdims=True)
            p = e * pl.reciprocal(s, approx=False)   # EUP recip, not VPU divide

            hv = jnp.dot(p, v, preferred_element_type=jnp.float32)   # (T, HS)
            # Per-head accumulation through W_proj rows: no head concat.
            out_b = out_b + jnp.dot(
                hv, wproj[h * head_size:(h + 1) * head_size, :],
                preferred_element_type=jnp.float32)                  # (T, C)
        batch_outs.append(out_b)

    out = jnp.concatenate(batch_outs, axis=0)        # (B*T, C), sublane concat
    o_ref[...] = out.astype(o_ref.dtype)


def pack_mha_weights(wk, wq, wv, n_embed):
    """One-time init-path packing: (H, C, HS) x3 -> (C, H*3*HS).

    Folds the 1/sqrt(n_embed) attention scale into Q and lays each head out
    contiguously as [k_h | q_h*scale | v_h]."""
    scale = 1.0 / (n_embed ** 0.5)
    packed = jnp.concatenate([wk, wq * scale, wv], axis=-1)          # (H, C, 3*HS)
    H, C, three_hs = packed.shape
    return jnp.transpose(packed, (1, 0, 2)).reshape(C, H * three_hs)


@functools.partial(jax.jit, static_argnames=("n_heads", "head_size"))
def multi_head_attention(x, wqkv, w_proj, b_proj, *, n_heads, head_size):
    """x: (B, T, C); wqkv: (C, 3*H*HS) from pack_mha_weights;
    w_proj: (H*HS, C); b_proj: (1, C)."""
    B, T, C = x.shape
    H, HS = n_heads, head_size
    x2 = x.reshape(B * T, C)                        # free contiguous reshape

    flops = (2 * B * T * C * 3 * H * HS             # fused QKV projection
             + B * H * (4 * T * T * HS              # k@q^T and p@v
                        + 2 * T * HS * C))          # per-head output proj
    cost = pl.CostEstimate(
        flops=flops,
        transcendentals=B * H * T * T,
        bytes_accessed=4 * (2 * B * T * C + C * 3 * H * HS + H * HS * C + C))

    out = pl.pallas_call(
        functools.partial(_mha_fused_kernel, batch=B, seq=T,
                          n_heads=H, head_size=HS),
        out_shape=jax.ShapeDtypeStruct((B * T, C), jnp.float32),
        grid=(1,),
        in_specs=[
            pl.BlockSpec((B * T, C), lambda i: (0, 0)),
            # Constant index maps -> weights DMA'd once, resident in VMEM.
            pl.BlockSpec((C, 3 * H * HS), lambda i: (0, 0)),
            pl.BlockSpec((H * HS, C), lambda i: (0, 0)),
            pl.BlockSpec((1, C), lambda i: (0, 0)),
        ],
        out_specs=pl.BlockSpec((B * T, C), lambda i: (0, 0)),
        compiler_params=pltpu.CompilerParams(
            dimension_semantics=("arbitrary",)),
        cost_estimate=cost,
    )(x2, wqkv, w_proj, b_proj)
    return out.reshape(B, T, C)


if __name__ == "__main__":
    # Shapes from the module defaults: n_embed=32, block_size=8, 4 heads of 8.
    B, T, C = 2, 8, 32
    H, HS = 4, 8

    key = jax.random.PRNGKey(0)
    kx, kk, kq, kv, kw, kb = jax.random.split(key, 6)

    x = jax.random.normal(kx, (B, T, C), dtype=jnp.float32)
    # Per-head linear weights (no bias), stored as (H, C, HS) so kernel does x @ W.
    wk = jax.random.normal(kk, (H, C, HS), dtype=jnp.float32) * 0.1
    wq = jax.random.normal(kq, (H, C, HS), dtype=jnp.float32) * 0.1
    wv = jax.random.normal(kv, (H, C, HS), dtype=jnp.float32) * 0.1
    # Output projection nn.Linear(H*HS, C): stored transposed as (H*HS, C) + bias (1, C).
    w_proj = jax.random.normal(kw, (H * HS, C), dtype=jnp.float32) * 0.1
    b_proj = jax.random.normal(kb, (1, C), dtype=jnp.float32) * 0.1

    # One-time init-path packing (NOT in the per-forward path).
    wqkv = pack_mha_weights(wk, wq, wv, C)

    out = multi_head_attention(x, wqkv, w_proj, b_proj, n_heads=H, head_size=HS)
    jax.block_until_ready(out)

    # Pure-JAX reference check (same math as the PyTorch forward, eval mode).
    def ref(x):
        outs = []
        for h in range(H):
            k = x @ wk[h]
            q = x @ wq[h]
            v = x @ wv[h]
            wei = (k @ jnp.swapaxes(q, -2, -1)) / (C ** 0.5)
            mask = jnp.tril(jnp.ones((T, T), dtype=bool))
            wei = jnp.where(mask, wei, -jnp.inf)
            wei = jax.nn.softmax(wei, axis=-1)
            outs.append(wei @ v)
        y = jnp.concatenate(outs, axis=-1)
        return y @ w_proj + b_proj

    expected = ref(x)
    assert jnp.allclose(out, expected, atol=1e-4, rtol=1e-4), "mismatch vs reference"
    print("KERNEL_OK")
</pallas_src>

<mosaic_0001>
module attributes {stable_mosaic.version = 11 : i64} {
  func.func @_mha_fused_kernel(%arg0: i32, %arg1: memref<16x32xf32, #tpu.memory_space<vmem>>, %arg2: memref<32x96xf32, #tpu.memory_space<vmem>>, %arg3: memref<32x32xf32, #tpu.memory_space<vmem>>, %arg4: memref<1x32xf32, #tpu.memory_space<vmem>>, %arg5: memref<16x32xf32, #tpu.memory_space<vmem>>) attributes {dimension_semantics = [#tpu.dimension_semantics<arbitrary>], iteration_bounds = array<i64: 1>, scalar_prefetch = 0 : i64, scratch_operands = 0 : i64, tpu.core_type = #tpu.core_type<tc>, window_params = [{pipeline_mode = #tpu.pipeline_mode<synchronous>, transform_indices = @transform_0, window_bounds = array<i64: 16, 32>}, {pipeline_mode = #tpu.pipeline_mode<synchronous>, transform_indices = @transform_1, window_bounds = array<i64: 32, 96>}, {pipeline_mode = #tpu.pipeline_mode<synchronous>, transform_indices = @transform_2, window_bounds = array<i64: 32, 32>}, {pipeline_mode = #tpu.pipeline_mode<synchronous>, transform_indices = @transform_3, window_bounds = array<i64: 1, 32>}, {pipeline_mode = #tpu.pipeline_mode<synchronous>, transform_indices = @transform_4, window_bounds = array<i64: 16, 32>}]} {
    %c0 = arith.constant 0 : index
    %c0_0 = arith.constant 0 : index
    %0 = vector.load %arg1[%c0, %c0_0] : memref<16x32xf32, #tpu.memory_space<vmem>>, vector<16x32xf32>
    %c0_1 = arith.constant 0 : index
    %c0_2 = arith.constant 0 : index
    %1 = vector.load %arg2[%c0_1, %c0_2] : memref<32x96xf32, #tpu.memory_space<vmem>>, vector<32x96xf32>
    %cst = arith.constant dense<0.000000e+00> : vector<16x96xf32>
    %2 = tpu.matmul %0, %1, %cst {dimension_numbers = #tpu.dot_dimension_numbers<[1], [0], [0], [1], [0, 0, 1, 1], [], []>} : vector<16x32xf32>, vector<32x96xf32>, vector<16x96xf32> -> vector<16x96xf32>
    %3 = tpu.iota {dimensions = array<i32: 0>} : vector<8x8xi32>
    %4 = tpu.iota {dimensions = array<i32: 1>} : vector<8x8xi32>
    %5 = arith.cmpi sge, %3, %4 : vector<8x8xi32>
    %c0_3 = arith.constant 0 : index
    %c0_4 = arith.constant 0 : index
    %6 = vector.load %arg3[%c0_3, %c0_4] : memref<32x32xf32, #tpu.memory_space<vmem>>, vector<32x32xf32>
    %c0_5 = arith.constant 0 : index
    %c0_6 = arith.constant 0 : index
    %7 = vector.load %arg4[%c0_5, %c0_6] : memref<1x32xf32, #tpu.memory_space<vmem>>, vector<1x32xf32>
    %8 = vector.extract_strided_slice %2 {offsets = [0, 0], sizes = [8, 96], strides = [1, 1]} : vector<16x96xf32> to vector<8x96xf32>
    %9 = vector.shape_cast %7 : vector<1x32xf32> to vector<1x32xf32>
    %10 = vector.broadcast %9 : vector<1x32xf32> to vector<8x32xf32>
    %11 = vector.extract_strided_slice %8 {offsets = [0, 0], sizes = [8, 8], strides = [1, 1]} : vector<8x96xf32> to vector<8x8xf32>
    %12 = vector.extract_strided_slice %8 {offsets = [0, 8], sizes = [8, 8], strides = [1, 1]} : vector<8x96xf32> to vector<8x8xf32>
    %13 = vector.extract_strided_slice %8 {offsets = [0, 16], sizes = [8, 8], strides = [1, 1]} : vector<8x96xf32> to vector<8x8xf32>
    %cst_7 = arith.constant dense<0.000000e+00> : vector<8x8xf32>
    %14 = tpu.matmul %11, %12, %cst_7 {dimension_numbers = #tpu.dot_dimension_numbers<[1], [1], [0], [0], [0, 0, 1, 0], [], []>} : vector<8x8xf32>, vector<8x8xf32>, vector<8x8xf32> -> vector<8x8xf32>
    %cst_8 = arith.constant 0xFF800000 : f32
    %15 = vector.broadcast %cst_8 : f32 to vector<8x8xf32>
    %16 = arith.select %5, %14, %15 : vector<8x8xi1>, vector<8x8xf32>
    %cst_9 = arith.constant dense<0xFF800000> : vector<8xf32>
    %17 = vector.multi_reduction <maximumf>, %16, %cst_9 [1] : vector<8x8xf32> to vector<8xf32>
    %18 = vector.shape_cast %17 : vector<8xf32> to vector<8x1xf32>
    %19 = vector.broadcast %18 : vector<8x1xf32> to vector<8x8xf32>
    %20 = arith.subf %16, %19 : vector<8x8xf32>
    %21 = math.exp %20 : vector<8x8xf32>
    %cst_10 = arith.constant dense<0.000000e+00> : vector<8xf32>
    %22 = vector.multi_reduction <add>, %21, %cst_10 [1] : vector<8x8xf32> to vector<8xf32>
    %23 = vector.shape_cast %22 : vector<8xf32> to vector<8x1xf32>
    %24 = tpu.reciprocal %23 : vector<8x1xf32> -> vector<8x1xf32>
    %25 = vector.broadcast %24 : vector<8x1xf32> to vector<8x8xf32>
    %26 = arith.mulf %21, %25 : vector<8x8xf32>
    %cst_11 = arith.constant dense<0.000000e+00> : vector<8x8xf32>
    %27 = tpu.matmul %26, %13, %cst_11 {dimension_numbers = #tpu.dot_dimension_numbers<[1], [0], [0], [1], [0, 0, 1, 1], [], []>} : vector<8x8xf32>, vector<8x8xf32>, vector<8x8xf32> -> vector<8x8xf32>
    %28 = vector.extract_strided_slice %6 {offsets = [0, 0], sizes = [8, 32], strides = [1, 1]} : vector<32x32xf32> to vector<8x32xf32>
    %cst_12 = arith.constant dense<0.000000e+00> : vector<8x32xf32>
    %29 = tpu.matmul %27, %28, %cst_12 {dimension_numbers = #tpu.dot_dimension_numbers<[1], [0], [0], [1], [0, 0, 1, 1], [], []>} : vector<8x8xf32>, vector<8x32xf32>, vector<8x32xf32> -> vector<8x32xf32>
    %30 = arith.addf %10, %29 : vector<8x32xf32>
    %31 = vector.extract_strided_slice %8 {offsets = [0, 24], sizes = [8, 8], strides = [1, 1]} : vector<8x96xf32> to vector<8x8xf32>
    %32 = vector.extract_strided_slice %8 {offsets = [0, 32], sizes = [8, 8], strides = [1, 1]} : vector<8x96xf32> to vector<8x8xf32>
    %33 = vector.extract_strided_slice %8 {offsets = [0, 40], sizes = [8, 8], strides = [1, 1]} : vector<8x96xf32> to vector<8x8xf32>
    %cst_13 = arith.constant dense<0.000000e+00> : vector<8x8xf32>
    %34 = tpu.matmul %31, %32, %cst_13 {dimension_numbers = #tpu.dot_dimension_numbers<[1], [1], [0], [0], [0, 0, 1, 0], [], []>} : vector<8x8xf32>, vector<8x8xf32>, vector<8x8xf32> -> vector<8x8xf32>
    %cst_14 = arith.constant 0xFF800000 : f32
    %35 = vector.broadcast %cst_14 : f32 to vector<8x8xf32>
    %36 = arith.select %5, %34, %35 : vector<8x8xi1>, vector<8x8xf32>
    %cst_15 = arith.constant dense<0xFF800000> : vector<8xf32>
    %37 = vector.multi_reduction <maximumf>, %36, %cst_15 [1] : vector<8x8xf32> to vector<8xf32>
    %38 = vector.shape_cast %37 : vector<8xf32> to vector<8x1xf32>
    %39 = vector.broadcast %38 : vector<8x1xf32> to vector<8x8xf32>
    %40 = arith.subf %36, %39 : vector<8x8xf32>
    %41 = math.exp %40 : vector<8x8xf32>
    %cst_16 = arith.constant dense<0.000000e+00> : vector<8xf32>
    %42 = vector.multi_reduction <add>, %41, %cst_16 [1] : vector<8x8xf32> to vector<8xf32>
    %43 = vector.shape_cast %42 : vector<8xf32> to vector<8x1xf32>
    %44 = tpu.reciprocal %43 : vector<8x1xf32> -> vector<8x1xf32>
    %45 = vector.broadcast %44 : vector<8x1xf32> to vector<8x8xf32>
    %46 = arith.mulf %41, %45 : vector<8x8xf32>
    %cst_17 = arith.constant dense<0.000000e+00> : vector<8x8xf32>
    %47 = tpu.matmul %46, %33, %cst_17 {dimension_numbers = #tpu.dot_dimension_numbers<[1], [0], [0], [1], [0, 0, 1, 1], [], []>} : vector<8x8xf32>, vector<8x8xf32>, vector<8x8xf32> -> vector<8x8xf32>
    %48 = vector.extract_strided_slice %6 {offsets = [8, 0], sizes = [8, 32], strides = [1, 1]} : vector<32x32xf32> to vector<8x32xf32>
    %cst_18 = arith.constant dense<0.000000e+00> : vector<8x32xf32>
    %49 = tpu.matmul %47, %48, %cst_18 {dimension_numbers = #tpu.dot_dimension_numbers<[1], [0], [0], [1], [0, 0, 1, 1], [], []>} : vector<8x8xf32>, vector<8x32xf32>, vector<8x32xf32> -> vector<8x32xf32>
    %50 = arith.addf %30, %49 : vector<8x32xf32>
    %51 = vector.extract_strided_slice %8 {offsets = [0, 48], sizes = [8, 8], strides = [1, 1]} : vector<8x96xf32> to vector<8x8xf32>
    %52 = vector.extract_strided_slice %8 {offsets = [0, 56], sizes = [8, 8], strides = [1, 1]} : vector<8x96xf32> to vector<8x8xf32>
    %53 = vector.extract_strided_slice %8 {offsets = [0, 64], sizes = [8, 8], strides = [1, 1]} : vector<8x96xf32> to vector<8x8xf32>
    %cst_19 = arith.constant dense<0.000000e+00> : vector<8x8xf32>
    %54 = tpu.matmul %51, %52, %cst_19 {dimension_numbers = #tpu.dot_dimension_numbers<[1], [1], [0], [0], [0, 0, 1, 0], [], []>} : vector<8x8xf32>, vector<8x8xf32>, vector<8x8xf32> -> vector<8x8xf32>
    %cst_20 = arith.constant 0xFF800000 : f32
    %55 = vector.broadcast %cst_20 : f32 to vector<8x8xf32>
    %56 = arith.select %5, %54, %55 : vector<8x8xi1>, vector<8x8xf32>
    %cst_21 = arith.constant dense<0xFF800000> : vector<8xf32>
    %57 = vector.multi_reduction <maximumf>, %56, %cst_21 [1] : vector<8x8xf32> to vector<8xf32>
    %58 = vector.shape_cast %57 : vector<8xf32> to vector<8x1xf32>
    %59 = vector.broadcast %58 : vector<8x1xf32> to vector<8x8xf32>
    %60 = arith.subf %56, %59 : vector<8x8xf32>
    %61 = math.exp %60 : vector<8x8xf32>
    %cst_22 = arith.constant dense<0.000000e+00> : vector<8xf32>
    %62 = vector.multi_reduction <add>, %61, %cst_22 [1] : vector<8x8xf32> to vector<8xf32>
    %63 = vector.shape_cast %62 : vector<8xf32> to vector<8x1xf32>
    %64 = tpu.reciprocal %63 : vector<8x1xf32> -> vector<8x1xf32>
    %65 = vector.broadcast %64 : vector<8x1xf32> to vector<8x8xf32>
    %66 = arith.mulf %61, %65 : vector<8x8xf32>
    %cst_23 = arith.constant dense<0.000000e+00> : vector<8x8xf32>
    %67 = tpu.matmul %66, %53, %cst_23 {dimension_numbers = #tpu.dot_dimension_numbers<[1], [0], [0], [1], [0, 0, 1, 1], [], []>} : vector<8x8xf32>, vector<8x8xf32>, vector<8x8xf32> -> vector<8x8xf32>
    %68 = vector.extract_strided_slice %6 {offsets = [16, 0], sizes = [8, 32], strides = [1, 1]} : vector<32x32xf32> to vector<8x32xf32>
    %cst_24 = arith.constant dense<0.000000e+00> : vector<8x32xf32>
    %69 = tpu.matmul %67, %68, %cst_24 {dimension_numbers = #tpu.dot_dimension_numbers<[1], [0], [0], [1], [0, 0, 1, 1], [], []>} : vector<8x8xf32>, vector<8x32xf32>, vector<8x32xf32> -> vector<8x32xf32>
    %70 = arith.addf %50, %69 : vector<8x32xf32>
    %71 = vector.extract_strided_slice %8 {offsets = [0, 72], sizes = [8, 8], strides = [1, 1]} : vector<8x96xf32> to vector<8x8xf32>
    %72 = vector.extract_strided_slice %8 {offsets = [0, 80], sizes = [8, 8], strides = [1, 1]} : vector<8x96xf32> to vector<8x8xf32>
    %73 = vector.extract_strided_slice %8 {offsets = [0, 88], sizes = [8, 8], strides = [1, 1]} : vector<8x96xf32> to vector<8x8xf32>
    %cst_25 = arith.constant dense<0.000000e+00> : vector<8x8xf32>
    %74 = tpu.matmul %71, %72, %cst_25 {dimension_numbers = #tpu.dot_dimension_numbers<[1], [1], [0], [0], [0, 0, 1, 0], [], []>} : vector<8x8xf32>, vector<8x8xf32>, vector<8x8xf32> -> vector<8x8xf32>
    %cst_26 = arith.constant 0xFF800000 : f32
    %75 = vector.broadcast %cst_26 : f32 to vector<8x8xf32>
    %76 = arith.select %5, %74, %75 : vector<8x8xi1>, vector<8x8xf32>
    %cst_27 = arith.constant dense<0xFF800000> : vector<8xf32>
    %77 = vector.multi_reduction <maximumf>, %76, %cst_27 [1] : vector<8x8xf32> to vector<8xf32>
    %78 = vector.shape_cast %77 : vector<8xf32> to vector<8x1xf32>
    %79 = vector.broadcast %78 : vector<8x1xf32> to vector<8x8xf32>
    %80 = arith.subf %76, %79 : vector<8x8xf32>
    %81 = math.exp %80 : vector<8x8xf32>
    %cst_28 = arith.constant dense<0.000000e+00> : vector<8xf32>
    %82 = vector.multi_reduction <add>, %81, %cst_28 [1] : vector<8x8xf32> to vector<8xf32>
    %83 = vector.shape_cast %82 : vector<8xf32> to vector<8x1xf32>
    %84 = tpu.reciprocal %83 : vector<8x1xf32> -> vector<8x1xf32>
    %85 = vector.broadcast %84 : vector<8x1xf32> to vector<8x8xf32>
    %86 = arith.mulf %81, %85 : vector<8x8xf32>
    %cst_29 = arith.constant dense<0.000000e+00> : vector<8x8xf32>
    %87 = tpu.matmul %86, %73, %cst_29 {dimension_numbers = #tpu.dot_dimension_numbers<[1], [0], [0], [1], [0, 0, 1, 1], [], []>} : vector<8x8xf32>, vector<8x8xf32>, vector<8x8xf32> -> vector<8x8xf32>
    %88 = vector.extract_strided_slice %6 {offsets = [24, 0], sizes = [8, 32], strides = [1, 1]} : vector<32x32xf32> to vector<8x32xf32>
    %cst_30 = arith.constant dense<0.000000e+00> : vector<8x32xf32>
    %89 = tpu.matmul %87, %88, %cst_30 {dimension_numbers = #tpu.dot_dimension_numbers<[1], [0], [0], [1], [0, 0, 1, 1], [], []>} : vector<8x8xf32>, vector<8x32xf32>, vector<8x32xf32> -> vector<8x32xf32>
    %90 = arith.addf %70, %89 : vector<8x32xf32>
    %91 = vector.extract_strided_slice %2 {offsets = [8, 0], sizes = [8, 96], strides = [1, 1]} : vector<16x96xf32> to vector<8x96xf32>
    %92 = vector.shape_cast %7 : vector<1x32xf32> to vector<1x32xf32>
    %93 = vector.broadcast %92 : vector<1x32xf32> to vector<8x32xf32>
    %94 = vector.extract_strided_slice %91 {offsets = [0, 0], sizes = [8, 8], strides = [1, 1]} : vector<8x96xf32> to vector<8x8xf32>
    %95 = vector.extract_strided_slice %91 {offsets = [0, 8], sizes = [8, 8], strides = [1, 1]} : vector<8x96xf32> to vector<8x8xf32>
    %96 = vector.extract_strided_slice %91 {offsets = [0, 16], sizes = [8, 8], strides = [1, 1]} : vector<8x96xf32> to vector<8x8xf32>
    %cst_31 = arith.constant dense<0.000000e+00> : vector<8x8xf32>
    %97 = tpu.matmul %94, %95, %cst_31 {dimension_numbers = #tpu.dot_dimension_numbers<[1], [1], [0], [0], [0, 0, 1, 0], [], []>} : vector<8x8xf32>, vector<8x8xf32>, vector<8x8xf32> -> vector<8x8xf32>
    %cst_32 = arith.constant 0xFF800000 : f32
    %98 = vector.broadcast %cst_32 : f32 to vector<8x8xf32>
    %99 = arith.select %5, %97, %98 : vector<8x8xi1>, vector<8x8xf32>
    %cst_33 = arith.constant dense<0xFF800000> : vector<8xf32>
    %100 = vector.multi_reduction <maximumf>, %99, %cst_33 [1] : vector<8x8xf32> to vector<8xf32>
    %101 = vector.shape_cast %100 : vector<8xf32> to vector<8x1xf32>
    %102 = vector.broadcast %101 : vector<8x1xf32> to vector<8x8xf32>
    %103 = arith.subf %99, %102 : vector<8x8xf32>
    %104 = math.exp %103 : vector<8x8xf32>
    %cst_34 = arith.constant dense<0.000000e+00> : vector<8xf32>
    %105 = vector.multi_reduction <add>, %104, %cst_34 [1] : vector<8x8xf32> to vector<8xf32>
    %106 = vector.shape_cast %105 : vector<8xf32> to vector<8x1xf32>
    %107 = tpu.reciprocal %106 : vector<8x1xf32> -> vector<8x1xf32>
    %108 = vector.broadcast %107 : vector<8x1xf32> to vector<8x8xf32>
    %109 = arith.mulf %104, %108 : vector<8x8xf32>
    %cst_35 = arith.constant dense<0.000000e+00> : vector<8x8xf32>
    %110 = tpu.matmul %109, %96, %cst_35 {dimension_numbers = #tpu.dot_dimension_numbers<[1], [0], [0], [1], [0, 0, 1, 1], [], []>} : vector<8x8xf32>, vector<8x8xf32>, vector<8x8xf32> -> vector<8x8xf32>
    %111 = vector.extract_strided_slice %6 {offsets = [0, 0], sizes = [8, 32], strides = [1, 1]} : vector<32x32xf32> to vector<8x32xf32>
    %cst_36 = arith.constant dense<0.000000e+00> : vector<8x32xf32>
    %112 = tpu.matmul %110, %111, %cst_36 {dimension_numbers = #tpu.dot_dimension_numbers<[1], [0], [0], [1], [0, 0, 1, 1], [], []>} : vector<8x8xf32>, vector<8x32xf32>, vector<8x32xf32> -> vector<8x32xf32>
    %113 = arith.addf %93, %112 : vector<8x32xf32>
    %114 = vector.extract_strided_slice %91 {offsets = [0, 24], sizes = [8, 8], strides = [1, 1]} : vector<8x96xf32> to vector<8x8xf32>
    %115 = vector.extract_strided_slice %91 {offsets = [0, 32], sizes = [8, 8], strides = [1, 1]} : vector<8x96xf32> to vector<8x8xf32>
    %116 = vector.extract_strided_slice %91 {offsets = [0, 40], sizes = [8, 8], strides = [1, 1]} : vector<8x96xf32> to vector<8x8xf32>
    %cst_37 = arith.constant dense<0.000000e+00> : vector<8x8xf32>
    %117 = tpu.matmul %114, %115, %cst_37 {dimension_numbers = #tpu.dot_dimension_numbers<[1], [1], [0], [0], [0, 0, 1, 0], [], []>} : vector<8x8xf32>, vector<8x8xf32>, vector<8x8xf32> -> vector<8x8xf32>
    %cst_38 = arith.constant 0xFF800000 : f32
    %118 = vector.broadcast %cst_38 : f32 to vector<8x8xf32>
    %119 = arith.select %5, %117, %118 : vector<8x8xi1>, vector<8x8xf32>
    %cst_39 = arith.constant dense<0xFF800000> : vector<8xf32>
    %120 = vector.multi_reduction <maximumf>, %119, %cst_39 [1] : vector<8x8xf32> to vector<8xf32>
    %121 = vector.shape_cast %120 : vector<8xf32> to vector<8x1xf32>
    %122 = vector.broadcast %121 : vector<8x1xf32> to vector<8x8xf32>
    %123 = arith.subf %119, %122 : vector<8x8xf32>
    %124 = math.exp %123 : vector<8x8xf32>
    %cst_40 = arith.constant dense<0.000000e+00> : vector<8xf32>
    %125 = vector.multi_reduction <add>, %124, %cst_40 [1] : vector<8x8xf32> to vector<8xf32>
    %126 = vector.shape_cast %125 : vector<8xf32> to vector<8x1xf32>
    %127 = tpu.reciprocal %126 : vector<8x1xf32> -> vector<8x1xf32>
    %128 = vector.broadcast %127 : vector<8x1xf32> to vector<8x8xf32>
    %129 = arith.mulf %124, %128 : vector<8x8xf32>
    %cst_41 = arith.constant dense<0.000000e+00> : vector<8x8xf32>
    %130 = tpu.matmul %129, %116, %cst_41 {dimension_numbers = #tpu.dot_dimension_numbers<[1], [0], [0], [1], [0, 0, 1, 1], [], []>} : vector<8x8xf32>, vector<8x8xf32>, vector<8x8xf32> -> vector<8x8xf32>
    %131 = vector.extract_strided_slice %6 {offsets = [8, 0], sizes = [8, 32], strides = [1, 1]} : vector<32x32xf32> to vector<8x32xf32>
    %cst_42 = arith.constant dense<0.000000e+00> : vector<8x32xf32>
    %132 = tpu.matmul %130, %131, %cst_42 {dimension_numbers = #tpu.dot_dimension_numbers<[1], [0], [0], [1], [0, 0, 1, 1], [], []>} : vector<8x8xf32>, vector<8x32xf32>, vector<8x32xf32> -> vector<8x32xf32>
    %133 = arith.addf %113, %132 : vector<8x32xf32>
    %134 = vector.extract_strided_slice %91 {offsets = [0, 48], sizes = [8, 8], strides = [1, 1]} : vector<8x96xf32> to vector<8x8xf32>
    %135 = vector.extract_strided_slice %91 {offsets = [0, 56], sizes = [8, 8], strides = [1, 1]} : vector<8x96xf32> to vector<8x8xf32>
    %136 = vector.extract_strided_slice %91 {offsets = [0, 64], sizes = [8, 8], strides = [1, 1]} : vector<8x96xf32> to vector<8x8xf32>
    %cst_43 = arith.constant dense<0.000000e+00> : vector<8x8xf32>
    %137 = tpu.matmul %134, %135, %cst_43 {dimension_numbers = #tpu.dot_dimension_numbers<[1], [1], [0], [0], [0, 0, 1, 0], [], []>} : vector<8x8xf32>, vector<8x8xf32>, vector<8x8xf32> -> vector<8x8xf32>
    %cst_44 = arith.constant 0xFF800000 : f32
    %138 = vector.broadcast %cst_44 : f32 to vector<8x8xf32>
    %139 = arith.select %5, %137, %138 : vector<8x8xi1>, vector<8x8xf32>
    %cst_45 = arith.constant dense<0xFF800000> : vector<8xf32>
    %140 = vector.multi_reduction <maximumf>, %139, %cst_45 [1] : vector<8x8xf32> to vector<8xf32>
    %141 = vector.shape_cast %140 : vector<8xf32> to vector<8x1xf32>
    %142 = vector.broadcast %141 : vector<8x1xf32> to vector<8x8xf32>
    %143 = arith.subf %139, %142 : vector<8x8xf32>
    %144 = math.exp %143 : vector<8x8xf32>
    %cst_46 = arith.constant dense<0.000000e+00> : vector<8xf32>
    %145 = vector.multi_reduction <add>, %144, %cst_46 [1] : vector<8x8xf32> to vector<8xf32>
    %146 = vector.shape_cast %145 : vector<8xf32> to vector<8x1xf32>
    %147 = tpu.reciprocal %146 : vector<8x1xf32> -> vector<8x1xf32>
    %148 = vector.broadcast %147 : vector<8x1xf32> to vector<8x8xf32>
    %149 = arith.mulf %144, %148 : vector<8x8xf32>
    %cst_47 = arith.constant dense<0.000000e+00> : vector<8x8xf32>
    %150 = tpu.matmul %149, %136, %cst_47 {dimension_numbers = #tpu.dot_dimension_numbers<[1], [0], [0], [1], [0, 0, 1, 1], [], []>} : vector<8x8xf32>, vector<8x8xf32>, vector<8x8xf32> -> vector<8x8xf32>
    %151 = vector.extract_strided_slice %6 {offsets = [16, 0], sizes = [8, 32], strides = [1, 1]} : vector<32x32xf32> to vector<8x32xf32>
    %cst_48 = arith.constant dense<0.000000e+00> : vector<8x32xf32>
    %152 = tpu.matmul %150, %151, %cst_48 {dimension_numbers = #tpu.dot_dimension_numbers<[1], [0], [0], [1], [0, 0, 1, 1], [], []>} : vector<8x8xf32>, vector<8x32xf32>, vector<8x32xf32> -> vector<8x32xf32>
    %153 = arith.addf %133, %152 : vector<8x32xf32>
    %154 = vector.extract_strided_slice %91 {offsets = [0, 72], sizes = [8, 8], strides = [1, 1]} : vector<8x96xf32> to vector<8x8xf32>
    %155 = vector.extract_strided_slice %91 {offsets = [0, 80], sizes = [8, 8], strides = [1, 1]} : vector<8x96xf32> to vector<8x8xf32>
    %156 = vector.extract_strided_slice %91 {offsets = [0, 88], sizes = [8, 8], strides = [1, 1]} : vector<8x96xf32> to vector<8x8xf32>
    %cst_49 = arith.constant dense<0.000000e+00> : vector<8x8xf32>
    %157 = tpu.matmul %154, %155, %cst_49 {dimension_numbers = #tpu.dot_dimension_numbers<[1], [1], [0], [0], [0, 0, 1, 0], [], []>} : vector<8x8xf32>, vector<8x8xf32>, vector<8x8xf32> -> vector<8x8xf32>
    %cst_50 = arith.constant 0xFF800000 : f32
    %158 = vector.broadcast %cst_50 : f32 to vector<8x8xf32>
    %159 = arith.select %5, %157, %158 : vector<8x8xi1>, vector<8x8xf32>
    %cst_51 = arith.constant dense<0xFF800000> : vector<8xf32>
    %160 = vector.multi_reduction <maximumf>, %159, %cst_51 [1] : vector<8x8xf32> to vector<8xf32>
    %161 = vector.shape_cast %160 : vector<8xf32> to vector<8x1xf32>
    %162 = vector.broadcast %161 : vector<8x1xf32> to vector<8x8xf32>
    %163 = arith.subf %159, %162 : vector<8x8xf32>
    %164 = math.exp %163 : vector<8x8xf32>
    %cst_52 = arith.constant dense<0.000000e+00> : vector<8xf32>
    %165 = vector.multi_reduction <add>, %164, %cst_52 [1] : vector<8x8xf32> to vector<8xf32>
    %166 = vector.shape_cast %165 : vector<8xf32> to vector<8x1xf32>
    %167 = tpu.reciprocal %166 : vector<8x1xf32> -> vector<8x1xf32>
    %168 = vector.broadcast %167 : vector<8x1xf32> to vector<8x8xf32>
    %169 = arith.mulf %164, %168 : vector<8x8xf32>
    %cst_53 = arith.constant dense<0.000000e+00> : vector<8x8xf32>
    %170 = tpu.matmul %169, %156, %cst_53 {dimension_numbers = #tpu.dot_dimension_numbers<[1], [0], [0], [1], [0, 0, 1, 1], [], []>} : vector<8x8xf32>, vector<8x8xf32>, vector<8x8xf32> -> vector<8x8xf32>
    %171 = vector.extract_strided_slice %6 {offsets = [24, 0], sizes = [8, 32], strides = [1, 1]} : vector<32x32xf32> to vector<8x32xf32>
    %cst_54 = arith.constant dense<0.000000e+00> : vector<8x32xf32>
    %172 = tpu.matmul %170, %171, %cst_54 {dimension_numbers = #tpu.dot_dimension_numbers<[1], [0], [0], [1], [0, 0, 1, 1], [], []>} : vector<8x8xf32>, vector<8x32xf32>, vector<8x32xf32> -> vector<8x32xf32>
    %173 = arith.addf %153, %172 : vector<8x32xf32>
    %174 = tpu.concatenate %90, %173 in 0 : vector<8x32xf32>, vector<8x32xf32> -> vector<16x32xf32>
    %c0_55 = arith.constant 0 : index
    %c0_56 = arith.constant 0 : index
    %175 = vector.load %arg5[%c0_55, %c0_56] : memref<16x32xf32, #tpu.memory_space<vmem>>, vector<16x32xf32>
    tpu.vector_store %arg5[%c0_55, %c0_56], %174 {strides = array<i32>} : memref<16x32xf32, #tpu.memory_space<vmem>>, vector<16x32xf32>,
    return
  }
  func.func @transform_0(%arg0: i32) -> (i32, i32) {
    %c0_i32 = arith.constant 0 : i32
    %c0_i32_0 = arith.constant 0 : i32
    %c0_i32_1 = arith.constant 0 : i32
    return %c0_i32, %c0_i32_0 : i32, i32
  }
  func.func @transform_1(%arg0: i32) -> (i32, i32) {
    %c0_i32 = arith.constant 0 : i32
    %c0_i32_0 = arith.constant 0 : i32
    %c0_i32_1 = arith.constant 0 : i32
    return %c0_i32, %c0_i32_0 : i32, i32
  }
  func.func @transform_2(%arg0: i32) -> (i32, i32) {
    %c0_i32 = arith.constant 0 : i32
    %c0_i32_0 = arith.constant 0 : i32
    %c0_i32_1 = arith.constant 0 : i32
    return %c0_i32, %c0_i32_0 : i32, i32
  }
  func.func @transform_3(%arg0: i32) -> (i32, i32) {
    %c0_i32 = arith.constant 0 : i32
    %c0_i32_0 = arith.constant 0 : i32
    %c0_i32_1 = arith.constant 0 : i32
    return %c0_i32, %c0_i32_0 : i32, i32
  }
  func.func @transform_4(%arg0: i32) -> (i32, i32) {
    %c0_i32 = arith.constant 0 : i32
    %c0_i32_0 = arith.constant 0 : i32
    %c0_i32_1 = arith.constant 0 : i32
    return %c0_i32, %c0_i32_0 : i32, i32
  }
}

</mosaic_0001>

<bundles_post_ra>
// kernel: multi_head_attention.1
= control target key start
LH: loop header
LB: loop body
LE: loop exit
PB: predicated region body
PF: predicated region fallthrough
CT: control target
= control target key end

     0   :  { %9 = vsyncpa [#allocation3], 0  ;;  %s2824_s0 = inlined_call_operand.hbm [shape: f32[16,32], index: 0, kind: input, shape index: {}]   ;;  %s2825_s1 = inlined_call_operand.hbm [shape: f32[32,96], index: 1, kind: input, shape index: {}]   ;;  %s2826_s2 = inlined_call_operand.hbm [shape: f32[32,32], index: 2, kind: input, shape index: {}]   ;;  %s2827_s3 = inlined_call_operand.vmem [shape: f32[1,32], index: 3, kind: input, shape index: {}]   ;;  %s2828_s4 = inlined_call_operand.hbm [shape: f32[16,32], index: 4, kind: output, shape index: {}]  }
   0x1   :  { %10 = vsyncpa [#allocation6], 0 }
   0x2   :  { %11 = vsyncpa [#allocation4], 0  ;;  %s2488_s15 = smov [#allocation5]   ;;  %s2489_s17 = smov [#allocation2]  }
   0x3   :  { %s29_s16 = sshll.u32 %s2488_s15, 4  ;;  %s17_s18 = sshll.u32 %s2489_s17, 4  ;;  %s30_s16 = int_to_ptr.vmem [resolvable:$true] %s29_s16  ;;  %s2532_s18 = int_to_ptr.vmem [resolvable:$true] %s17_s18 }
   0x4   :  { %s2394_s21 = scalar_lea.hbm %s2825_s1, 512 }
   0x5   :  { %p2395_p0 = scmp.ne.s32.totalorder %s2825_s1, %s2394_s21  ;;  %p2398_p1 = scmp.lt.u32.totalorder %s2394_s21, %s2825_s1 }
   0x7   :  { %p2400_p2 = pnand %p2398_p1, %p2395_p0 }
   0x9   :  { %2403 = shalt.err (!%p2400_p2)
}
   0xa   :  { %s2404_s26 = scalar_lea.vmem %s30_s16, 512  ;;  %p2409_p4 = scmp.lt.s32.totalorder %s30_s16, %s30_s16 }
   0xb   :  { %p2405_p3 = scmp.ne.s32.totalorder %s30_s16, %s2404_s26  ;;  %p2410_p5 = scmp.lt.s32.totalorder %s2404_s26, %s2404_s26 }
   0xd   :  { %p2411_p6 = por %p2410_p5, %p2409_p4 }
   0xf   :  { %p2412_p7 = pnand %p2411_p6, %p2405_p3 }
  0x11   :  { %2415 = shalt.err (!%p2412_p7)
}
  0x12   :  { %s2490_s27 = smov 128   ;;  %s2491_s28 = smov 8  }
  0x13   :  { %35 = dma.hbm_to_vmem [thread:$0]  %s2825_s1, 512, %s30_s16, [#allocation6], %s2490_s27, %s2490_s27, %s2491_s28  }
  0x14   :  { %s2416_s7 = scalar_lea.hbm %s2824_s0, 256 }
  0x15   :  { %p2417_p8 = scmp.ne.s32.totalorder %s2824_s0, %s2416_s7  ;;  %p2420_p9 = scmp.lt.u32.totalorder %s2416_s7, %s2824_s0 }
  0x17   :  { %p2422_p10 = pnand %p2420_p9, %p2417_p8 }
  0x19   :  { %2425 = shalt.err (!%p2422_p10)
}
  0x1a   :  { %s2426_s12 = scalar_lea.vmem %s2532_s18, 256  ;;  %p2431_p12 = scmp.lt.s32.totalorder %s2532_s18, %s2532_s18 }
  0x1b   :  { %p2427_p11 = scmp.ne.s32.totalorder %s2532_s18, %s2426_s12  ;;  %p2432_p13 = scmp.lt.s32.totalorder %s2426_s12, %s2426_s12 }
  0x1d   :  { %p2433_p0 = por %p2432_p13, %p2431_p12 }
  0x1f   :  { %p2434_p1 = pnand %p2433_p0, %p2427_p11 }
  0x21   :  { %2437 = shalt.err (!%p2434_p1)
}
  0x22   :  { %23 = dma.hbm_to_vmem [thread:$0]  %s2824_s0, 256, %s2532_s18, [#allocation3], %s2490_s27, %s2490_s27, %s2491_s28  }
  0x23   :  { %s2492_s14 = smov [#allocation7]   ;;  %s2438_s19 = scalar_lea.hbm %s2826_s2, 512 }
  0x24   :  { %s41_s15 = sshll.u32 %s2492_s14, 4  ;;  %p2439_p2 = scmp.ne.s32.totalorder %s2826_s2, %s2438_s19  ;;  %s42_s15 = int_to_ptr.vmem [resolvable:$true] %s41_s15 }
  0x25   :  { %p2442_p3 = scmp.lt.u32.totalorder %s2438_s19, %s2826_s2 }
  0x27   :  { %p2444_p4 = pnand %p2442_p3, %p2439_p2 }
  0x29   :  { %2447 = shalt.err (!%p2444_p4)
}
  0x2a   :  { %s2448_s24 = scalar_lea.vmem %s42_s15, 512  ;;  %p2453_p6 = scmp.lt.s32.totalorder %s42_s15, %s42_s15 }
  0x2b   :  { %p2449_p5 = scmp.ne.s32.totalorder %s42_s15, %s2448_s24  ;;  %p2454_p7 = scmp.lt.s32.totalorder %s2448_s24, %s2448_s24 }
  0x2d   :  { %p2455_p8 = por %p2454_p7, %p2453_p6 }
  0x2f   :  { %p2456_p9 = pnand %p2455_p8, %p2449_p5 }
  0x31   :  { %2459 = shalt.err (!%p2456_p9)
}
  0x32   :  { %47 = dma.hbm_to_vmem [thread:$0]  %s2826_s2, 512, %s42_s15, [#allocation6], %s2490_s27, %s2490_s27, %s2491_s28  }
  0x33   :  { %2482 = dma.done.wait [#allocation3], 256  }
  0x34   :  { %2483 = vsyncadd [#allocation3], 4294967040 }
  0x35   :  { %2484 = dma.done.wait [#allocation6], 1024  }
  0x36   :  { %2485 = vsyncadd [#allocation6], 4294966272  ;;  %vm65_vm0 = vcmask 261120   ;;  %v61_v0 = vld [vmem:[#allocation5] sm:$0xff]  ;;  %v62_v1 = vld [vmem:[#allocation5 + $0x8] sm:$0xff]  ;;  %v2493_v8 = vmov 0.0   ;;  %v147_v12 = vlaneseq }
  0x37   :  { %v63_v2 = vld [vmem:[#allocation5 + $0x10] sm:$0xff]  ;;  %v2322_v3 = vpack.c.bf16 %v62_v1, %v61_v0  ;;  %v64_v4 = vld [vmem:[#allocation5 + $0x18] sm:$0xff]  ;;  %2202 = vmatprep.subr.mxu1 %v2493_v8  ;;  %vm2494_vm1 = vmmov 0   ;;  %s2495_s2 = smov 120   ;;  %vm166_vm2 = vcmask 64512   ;;  %s2496_s25 = smov 112  }
  0x38   :  { %v59_v5 = vld [vmem:[#allocation2] sm:$0xff]  ;;  %v2326_v6 = vpack.c.bf16 %v64_v4, %v63_v2  ;;  %v60_v7 = vld [vmem:[#allocation2 + $0x8] sm:$0xff]  ;;  %2204 = vmatprep.mubr.msk.f32.mxu1 %vm2494_vm1, %v2493_v8  ;;  %v148_v13 = vshrl.u32 %v147_v12, 7  ;;  %v150_v14 = vand.u32 127, %v147_v12  ;;  %s2497_s26 = smov 96   ;;  %s2498_s29 = smov 104  }
  0x39   :  { %2199 = vmatprep.mubr.msk.f32.mxu0 %vm65_vm0, %v59_v5  ;;  %2323 = vmatprep.subr.bf16.mxu0 %v2322_v3  ;;  %s2499_s30 = smov 72   ;;  %s2500_s5 = smov 80   ;;  %v2623_v29 = vld [vmem:[#allocation7] sm:$0xff] }
  0x3a   :  { %2325 = vmatpush3.bf16.msra.mxu0 %v2322_v3  ;;  %vm2604_vm3 = vcmp.ge.s32.totalorder %v148_v13, %v150_v14  ;;  %s2501_s6 = smov 64   ;;  %s2502_s7 = smov 48  }
  0x3b   :  { %2327 = vmatprep.subr.bf16.mxu0 %v2326_v6  ;;  %s2503_s8 = smov 56   ;;  %s2504_s9 = smov 88  }
  0x3c   :  { %s2505_s10 = smov 40  }
  0x3e   :  { %2329 = vmatpush3.bf16.msra.mxu0 %v2326_v6 }
  0x3f   :  { %2222 = vmatprep.subr.mxu0 %v2493_v8 }
  0x41   :  { %2200 = vmatmul.mubr.msk.f32.vlgmr.msra.gmra.mrb[0].mxu0 %vm65_vm0, %v60_v7 }
  0x42   :  { %2224 = vmatprep.mubr.msk.f32.mxu0 %vm2494_vm1, %v2493_v8 }
 0x114   :  { %v2592_v9 = vpop.f32.mrb[0].mxu0 }
 0x115   :  { %v2594_v10 = vpop.f32.mrb[1].mxu0 }
 0x116   :  { %164 = vrot.lane.b32.xlu0 %v2594_v10, %s2495_s2 }
 0x188   :  { %v165_v11 = vpop.permute.xlu0 %164 }
 0x189   :  { %2203 = vmatpush3.xpose.msk.msra.mxu1 %vm166_vm2, %v165_v11 }
 0x18a   :  { %2207 = vmatprep.subr.mxu1 %v2493_v8 }
 0x18c   :  { %2205 = vmatmul.mubr.msk.f32.vlgmr.msra.gmra.mrb[0].mxu1 %vm166_vm2, %v2594_v10 }
 0x18d   :  { %2209 = vmatprep.mubr.msk.f32.mxu1 %vm2494_vm1, %v2493_v8 }
 0x25f   :  { %v237_v16 = vpop.f32.mrb[0].mxu1 }
 0x260   :  { %v241_v17 = vsel %vm2604_vm3, %v237_v16, -inf  ;;  %v2206_v18 = vpop.f32.mrb[1].mxu1 }
 0x261   :  { %v242_v19 = vsel %vm166_vm2, %v241_v17, -inf }
 0x262   :  { %243 = vmax.xlane.f32.xlu0 %v242_v19 }
 0x2ef   :  { %v244_v20 = vpop.xlane.xlu0 %243 }
 0x2f0   :  { %v245_v21 = vsub.f32 %v241_v17, %v244_v20 }
 0x2f2   :  { %v246_v22 = vmul.f32 1.442695, %v245_v21 }
 0x2f4   :  { %2362 = vpow2.f32 %v246_v22 }
 0x2fe   :  { %v2363_v23 = vpop.eup %2362 }
 0x2ff   :  { %v248_v24 = vsel %vm166_vm2, %v2363_v23, 0.0 }
 0x300   :  { %249 = vadd.xlane.f32.xlu1 %v248_v24 }
 0x311   :  { %253 = vrot.lane.b32.xlu1 %v2594_v10, %s2496_s25 }
 0x315   :  { %405 = vrot.lane.b32.xlu1 %v2594_v10, %s2497_s26 }
 0x319   :  { %403 = vrot.lane.b32.xlu1 %v2594_v10, %s2498_s29 }
 0x31d   :  { %645 = vrot.lane.b32.xlu1 %v2594_v10, %s2499_s30 }
 0x321   :  { %643 = vrot.lane.b32.xlu1 %v2594_v10, %s2500_s5 }
 0x38d   :  { %v250_v25 = vpop.xlane.xlu1 %249 }
 0x38e   :  { %2364 = vrcp.f32 %v250_v25 }
 0x391   :  { %v254_v26 = vpop.permute.xlu1 %253 }
 0x392   :  { %2208 = vmatpush3.msra.mxu1 %v254_v26 }
 0x393   :  { %2212 = vmatprep.subr.mxu1 %v2493_v8 }
 0x395   :  { %v406_v30 = vpop.permute.xlu1 %405 }
 0x398   :  { %v2365_v27 = vpop.eup %2364 }
 0x399   :  { %v252_v28 = vmul.f32 %v2365_v27, %v2363_v23  ;;  %v404_v31 = vpop.permute.xlu1 %403 }
 0x39b   :  { %2210 = vmatmul.mubr.msk.f32.vlgmr.msra.gmra.mrb[2].mxu1 %vm166_vm2, %v252_v28 }
 0x39c   :  { %2213 = vmatpush3.msra.mxu1 %v2623_v29  ;;  %2214 = vmatprep.mubr.msk.f32.mxu1 %vm2494_vm1, %v2493_v8 }
 0x39d   :  { %2217 = vmatprep.subr.mxu1 %v2493_v8  ;;  %v646_v34 = vpop.permute.xlu1 %645 }
 0x3a1   :  { %v644_v35 = vpop.permute.xlu1 %643 }
 0x46e   :  { %v325_v32 = vpop.f32.mrb[2].mxu1 }
 0x46f   :  { %v2211_v33 = vpop.f32.mrb[3].mxu1  ;;  %2215 = vmatmul.mubr.msk.f32.vlgmr.msra.gmra.mrb[4].mxu1 %vm166_vm2, %v325_v32 }
 0x470   :  { %2218 = vmatpush3.xpose.msk.msra.mxu1 %vm166_vm2, %v406_v30  ;;  %2219 = vmatprep.mubr.msk.f32.mxu1 %vm2494_vm1, %v2493_v8 }
 0x471   :  { %2232 = vmatprep.subr.mxu1 %v2493_v8 }
 0x473   :  { %2220 = vmatmul.mubr.msk.f32.vlgmr.msra.gmra.mrb[6].mxu1 %vm166_vm2, %v404_v31 }
 0x474   :  { %2233 = vmatpush3.xpose.msk.msra.mxu1 %vm166_vm2, %v646_v34  ;;  %2234 = vmatprep.mubr.msk.f32.mxu1 %vm2494_vm1, %v2493_v8 }
 0x475   :  { %2237 = vmatprep.subr.mxu1 %v2493_v8 }
 0x477   :  { %2235 = vmatmul.mubr.msk.f32.vlgmr.msra.gmra.mrb[8].mxu1 %vm166_vm2, %v644_v35 }
 0x478   :  { %2239 = vmatprep.mubr.msk.f32.mxu1 %vm2494_vm1, %v2493_v8 }
 0x542   :  { %v2643_v36 = vpop.f32.mrb[4].mxu1 }
 0x543   :  { %v2216_v37 = vpop.f32.mrb[5].mxu1 }
 0x546   :  { %v2645_v38 = vpop.f32.mrb[6].mxu1 }
 0x547   :  { %v2221_v39 = vpop.f32.mrb[7].mxu1  ;;  %v481_v6 = vsel %vm2604_vm3, %v2645_v38, -inf }
 0x548   :  { %v482_v7 = vsel %vm166_vm2, %v481_v6, -inf }
 0x54a   :  { %v717_v40 = vpop.f32.mrb[8].mxu1 }
 0x54b   :  { %v721_v41 = vsel %vm2604_vm3, %v717_v40, -inf  ;;  %v2236_v42 = vpop.f32.mrb[9].mxu1 }
 0x54c   :  { %v722_v43 = vsel %vm166_vm2, %v721_v41, -inf }
 0x54d   :  { %723 = vmax.xlane.f32.xlu0 %v722_v43 }
 0x563   :  { %733 = vrot.lane.b32.xlu0 %v2594_v10, %s2501_s6 }
 0x567   :  { %885 = vrot.lane.b32.xlu0 %v2594_v10, %s2502_s7 }
 0x56b   :  { %883 = vrot.lane.b32.xlu0 %v2594_v10, %s2503_s8 }
 0x56f   :  { %1124 = vrot.lane.b32.xlu0 %v2592_v9, %s2495_s2 }
 0x5da   :  { %v724_v44 = vpop.xlane.xlu0 %723 }
 0x5db   :  { %v725_v45 = vsub.f32 %v721_v41, %v724_v44 }
 0x5dd   :  { %v726_v46 = vmul.f32 1.442695, %v725_v45 }
 0x5de   :  { %v734_v47 = vpop.permute.xlu0 %733 }
 0x5df   :  { %2366 = vpow2.f32 %v726_v46  ;;  %2238 = vmatpush3.msra.mxu1 %v734_v47  ;;  %v2733_v47 = vld [vmem:[#allocation7 + $0x8] sm:$0xff] }
 0x5e0   :  { %2247 = vmatprep.subr.mxu1 %v2493_v8 }
 0x5e2   :  { %v886_v51 = vpop.permute.xlu0 %885 }
 0x5e6   :  { %v884_v53 = vpop.permute.xlu0 %883 }
 0x5e9   :  { %v2367_v48 = vpop.eup %2366 }
 0x5ea   :  { %v728_v49 = vsel %vm166_vm2, %v2367_v48, 0.0  ;;  %v1125_v55 = vpop.permute.xlu0 %1124 }
 0x5eb   :  { %729 = vadd.xlane.f32.xlu1 %v728_v49 }
 0x5fc   :  { %1212 = vrot.lane.b32.xlu1 %v2592_v9, %s2496_s25 }
 0x678   :  { %v730_v50 = vpop.xlane.xlu1 %729 }
 0x679   :  { %2368 = vrcp.f32 %v730_v50 }
 0x67c   :  { %v1213_v56 = vpop.permute.xlu1 %1212 }
 0x683   :  { %v2369_v52 = vpop.eup %2368 }
 0x684   :  { %v732_v54 = vmul.f32 %v2369_v52, %v2367_v48 }
 0x686   :  { %2240 = vmatmul.mubr.msk.f32.vlgmr.msra.gmra.mrb[10].mxu1 %vm166_vm2, %v732_v54 }
 0x687   :  { %2248 = vmatpush3.xpose.msk.msra.mxu1 %vm166_vm2, %v886_v51  ;;  %2249 = vmatprep.mubr.msk.f32.mxu1 %vm2494_vm1, %v2493_v8 }
 0x688   :  { %2262 = vmatprep.subr.mxu1 %v2493_v8 }
 0x68a   :  { %2250 = vmatmul.mubr.msk.f32.vlgmr.msra.gmra.mrb[12].mxu1 %vm166_vm2, %v884_v53 }
 0x68b   :  { %2263 = vmatpush3.xpose.msk.msra.mxu1 %vm166_vm2, %v1125_v55  ;;  %2264 = vmatprep.mubr.msk.f32.mxu1 %vm2494_vm1, %v2493_v8  ;;  %v2742_v55 = vld [vmem:[#allocation7 + $0x10] sm:$0xff] }
 0x68c   :  { %2267 = vmatprep.subr.mxu1 %v2493_v8 }
 0x68e   :  { %2265 = vmatmul.mubr.msk.f32.vlgmr.msra.gmra.mrb[14].mxu1 %vm166_vm2, %v2592_v9 }
 0x68f   :  { %2268 = vmatpush3.msra.mxu1 %v1213_v56  ;;  %2269 = vmatprep.mubr.msk.f32.mxu1 %vm2494_vm1, %v2493_v8 }
 0x690   :  { %2277 = vmatprep.subr.mxu1 %v2493_v8 }
 0x759   :  { %v2677_v57 = vpop.f32.mrb[10].mxu1 }
 0x75a   :  { %v2241_v58 = vpop.f32.mrb[11].mxu1 }
 0x75d   :  { %v957_v59 = vpop.f32.mrb[12].mxu1 }
 0x75e   :  { %v2251_v60 = vpop.f32.mrb[13].mxu1  ;;  %v961_v11 = vsel %vm2604_vm3, %v957_v59, -inf }
 0x75f   :  { %v962_v12 = vsel %vm166_vm2, %v961_v11, -inf }
 0x761   :  { %v1196_v61 = vpop.f32.mrb[14].mxu1 }
 0x762   :  { %v1200_v62 = vsel %vm2604_vm3, %v1196_v61, -inf  ;;  %v2266_v63 = vpop.f32.mrb[15].mxu1 }
 0x763   :  { %v1201_v0 = vsel %vm166_vm2, %v1200_v62, -inf }
 0x764   :  { %1202 = vmax.xlane.f32.xlu0 %v1201_v0 }
 0x77a   :  { %1362 = vrot.lane.b32.xlu0 %v2592_v9, %s2498_s29 }
 0x77e   :  { %1604 = vrot.lane.b32.xlu0 %v2592_v9, %s2499_s30 }
 0x782   :  { %1602 = vrot.lane.b32.xlu0 %v2592_v9, %s2500_s5 }
 0x7f1   :  { %v1203_v1 = vpop.xlane.xlu0 %1202 }
 0x7f2   :  { %v1204_v2 = vsub.f32 %v1200_v62, %v1203_v1 }
 0x7f4   :  { %v1205_v3 = vmul.f32 1.442695, %v1204_v2 }
 0x7f5   :  { %v1363_v14 = vpop.permute.xlu0 %1362 }
 0x7f6   :  { %2370 = vpow2.f32 %v1205_v3  ;;  %v2758_v3 = vld [vmem:[#allocation7 + $0x18] sm:$0xff] }
 0x7f9   :  { %v1605_v19 = vpop.permute.xlu0 %1604 }
 0x7fd   :  { %v1603_v20 = vpop.permute.xlu0 %1602 }
 0x800   :  { %v2371_v4 = vpop.eup %2370 }
 0x801   :  { %v1207_v5 = vsel %vm166_vm2, %v2371_v4, 0.0 }
 0x802   :  { %1208 = vadd.xlane.f32.xlu1 %v1207_v5 }
 0x813   :  { %1364 = vrot.lane.b32.xlu1 %v2592_v9, %s2497_s26 }
 0x837   :  { %483 = vmax.xlane.f32.xlu1 %v482_v7 }
 0x848   :  { %493 = vrot.lane.b32.xlu1 %v2594_v10, %s2504_s9 }
 0x86c   :  { %963 = vmax.xlane.f32.xlu1 %v962_v12 }
 0x88f   :  { %v1209_v13 = vpop.xlane.xlu1 %1208 }
 0x890   :  { %2372 = vrcp.f32 %v1209_v13 }
 0x893   :  { %v1365_v18 = vpop.permute.xlu1 %1364 }
 0x89a   :  { %v2373_v16 = vpop.eup %2372 }
 0x89b   :  { %v1211_v17 = vmul.f32 %v2373_v16, %v2371_v4 }
 0x89d   :  { %2270 = vmatmul.mubr.msk.f32.vlgmr.msra.gmra.mrb[16].mxu1 %vm166_vm2, %v1211_v17 }
 0x89e   :  { %2278 = vmatpush3.xpose.msk.msra.mxu1 %vm166_vm2, %v1365_v18  ;;  %2279 = vmatprep.mubr.msk.f32.mxu1 %vm2494_vm1, %v2493_v8 }
 0x89f   :  { %2292 = vmatprep.subr.mxu1 %v2493_v8 }
 0x8a1   :  { %2280 = vmatmul.mubr.msk.f32.vlgmr.msra.gmra.mrb[18].mxu1 %vm166_vm2, %v1363_v14 }
 0x8a2   :  { %2293 = vmatpush3.xpose.msk.msra.mxu1 %vm166_vm2, %v1605_v19  ;;  %2294 = vmatprep.mubr.msk.f32.mxu1 %vm2494_vm1, %v2493_v8 }
 0x8a3   :  { %2297 = vmatprep.subr.mxu1 %v2493_v8 }
 0x8a5   :  { %2295 = vmatmul.mubr.msk.f32.vlgmr.msra.gmra.mrb[20].mxu1 %vm166_vm2, %v1603_v20 }
 0x8a6   :  { %2299 = vmatprep.mubr.msk.f32.mxu1 %vm2494_vm1, %v2493_v8 }
 0x8c4   :  { %v484_v21 = vpop.xlane.xlu1 %483 }
 0x8c5   :  { %v485_v22 = vsub.f32 %v481_v6, %v484_v21 }
 0x8c7   :  { %v486_v23 = vmul.f32 1.442695, %v485_v22  ;;  %v2104_v22 = vld [vmem:[%s2827_s3] ss:$0 sm:$0xff]  ;;  %s2506_s3 = smov [#allocation8]  }
 0x8c8   :  { %v494_v24 = vpop.permute.xlu1 %493  ;;  %s2089_s1 = sshll.u32 %s2506_s3, 4  ;;  %s2090_s1 = int_to_ptr.vmem [resolvable:$true] %s2089_s1 }
 0x8c9   :  { %2374 = vpow2.f32 %v486_v23  ;;  %2223 = vmatpush3.msra.mxu0 %v494_v24  ;;  %v402_v23 = vadd.f32 %v2104_v22, %v2643_v36  ;;  %s2460_s13 = scalar_lea.vmem %s2090_s1, 256  ;;  %p2465_p11 = scmp.lt.s32.totalorder %s2090_s1, %s2090_s1 }
 0x8ca   :  { %2227 = vmatprep.subr.mxu0 %v2493_v8  ;;  %p2461_p10 = scmp.ne.s32.totalorder %s2090_s1, %s2460_s13  ;;  %p2466_p12 = scmp.lt.s32.totalorder %s2460_s13, %s2460_s13 }
 0x8cc   :  { %p2467_p13 = por %p2466_p12, %p2465_p11 }
 0x8ce   :  { %p2468_p0 = pnand %p2467_p13, %p2461_p10 }
 0x8d3   :  { %v2375_v25 = vpop.eup %2374 }
 0x8d4   :  { %v488_v26 = vsel %vm166_vm2, %v2375_v25, 0.0 }
 0x8d5   :  { %489 = vadd.xlane.f32.xlu0 %v488_v26 }
 0x8f9   :  { %v964_v28 = vpop.xlane.xlu1 %963 }
 0x8fa   :  { %v965_v30 = vsub.f32 %v961_v11, %v964_v28 }
 0x8fc   :  { %v966_v32 = vmul.f32 1.442695, %v965_v30 }
 0x962   :  { %v490_v27 = vpop.xlane.xlu0 %489 }
 0x963   :  { %2376 = vrcp.f32 %v490_v27 }
 0x964   :  { %2378 = vpow2.f32 %v966_v32 }
 0x96d   :  { %v2377_v31 = vpop.eup %2376 }
 0x96e   :  { %v492_v33 = vmul.f32 %v2377_v31, %v2375_v25  ;;  %v2379_v43 = vpop.eup %2378 }
 0x96f   :  { %v968_v44 = vsel %vm166_vm2, %v2379_v43, 0.0 }
 0x970   :  { %2225 = vmatmul.mubr.msk.f32.vlgmr.msra.gmra.mrb[2].mxu0 %vm166_vm2, %v492_v33  ;;  %v2716_v34 = vpop.f32.mrb[16].mxu1 }
 0x971   :  { %v2271_v35 = vpop.f32.mrb[17].mxu1  ;;  %2229 = vmatprep.mubr.msk.f32.mxu0 %vm2494_vm1, %v2493_v8  ;;  %2228 = vmatpush3.msra.mxu0 %v2733_v47 }
 0x972   :  { %2242 = vmatprep.subr.mxu0 %v2493_v8 }
 0x974   :  { %v1436_v37 = vpop.f32.mrb[18].mxu1 }
 0x975   :  { %v2281_v38 = vpop.f32.mrb[19].mxu1  ;;  %v1440_v45 = vsel %vm2604_vm3, %v1436_v37, -inf }
 0x976   :  { %v1441_v46 = vsel %vm166_vm2, %v1440_v45, -inf }
 0x978   :  { %v1676_v39 = vpop.f32.mrb[20].mxu1 }
 0x979   :  { %v1680_v40 = vsel %vm2604_vm3, %v1676_v39, -inf  ;;  %v2296_v41 = vpop.f32.mrb[21].mxu1 }
 0x97a   :  { %v1681_v42 = vsel %vm166_vm2, %v1680_v40, -inf }
 0x97b   :  { %1682 = vmax.xlane.f32.xlu0 %v1681_v42 }
 0x97f   :  { %969 = vadd.xlane.f32.xlu0 %v968_v44 }
 0x995   :  { %973 = vrot.lane.b32.xlu0 %v2594_v10, %s2505_s10 }
 0x999   :  { %1844 = vrot.lane.b32.xlu0 %v2592_v9, %s2502_s7 }
 0x99d   :  { %1842 = vrot.lane.b32.xlu0 %v2592_v9, %s2503_s8 }
 0x9bc   :  { %1442 = vmax.xlane.f32.xlu0 %v1441_v46 }
 0x9d2   :  { %1452 = vrot.lane.b32.xlu0 %v2592_v9, %s2504_s9 }
 0xa08   :  { %v1683_v10 = vpop.xlane.xlu0 %1682 }
 0xa09   :  { %v1684_v48 = vsub.f32 %v1680_v40, %v1683_v10 }
 0xa0b   :  { %v1685_v49 = vmul.f32 1.442695, %v1684_v48 }
 0xa0c   :  { %v970_v52 = vpop.xlane.xlu0 %969 }
 0xa0d   :  { %2380 = vpow2.f32 %v1685_v49 }
 0xa0e   :  { %2382 = vrcp.f32 %v970_v52 }
 0xa10   :  { %v974_v53 = vpop.permute.xlu0 %973 }
 0xa14   :  { %v1845_v54 = vpop.permute.xlu0 %1844 }
 0xa17   :  { %v2381_v50 = vpop.eup %2380 }
 0xa18   :  { %v1687_v51 = vsel %vm166_vm2, %v2381_v50, 0.0  ;;  %v1843_v59 = vpop.permute.xlu0 %1842  ;;  %v2383_v62 = vpop.eup %2382 }
 0xa19   :  { %1688 = vadd.xlane.f32.xlu1 %v1687_v51  ;;  %v972_v0 = vmul.f32 %v2383_v62, %v2379_v43 }
 0xa2a   :  { %1692 = vrot.lane.b32.xlu1 %v2592_v9, %s2501_s6 }
 0xa43   :  { %v565_v56 = vpop.f32.mrb[2].mxu0 }
 0xa44   :  { %v2226_v58 = vpop.f32.mrb[3].mxu0  ;;  %2230 = vmatmul.mubr.msk.f32.vlgmr.msra.gmra.mrb[4].mxu0 %vm166_vm2, %v565_v56 }
 0xa45   :  { %2243 = vmatpush3.msra.mxu0 %v2742_v55  ;;  %2244 = vmatprep.mubr.msk.f32.mxu0 %vm2494_vm1, %v2493_v8 }
 0xa46   :  { %2252 = vmatprep.subr.mxu0 %v2493_v8 }
 0xa49   :  { %v1443_v60 = vpop.xlane.xlu0 %1442 }
 0xa4a   :  { %v1444_v61 = vsub.f32 %v1440_v45, %v1443_v60 }
 0xa4c   :  { %v1445_v63 = vmul.f32 1.442695, %v1444_v61  ;;  %2245 = vmatmul.mubr.msk.f32.vlgmr.msra.gmra.mrb[4].mxu0 %vm166_vm2, %v2677_v57 }
 0xa4d   :  { %2253 = vmatpush3.msra.mxu0 %v974_v53  ;;  %2254 = vmatprep.mubr.msk.f32.mxu0 %vm2494_vm1, %v2493_v8  ;;  %v1453_v14 = vpop.permute.xlu0 %1452 }
 0xa4e   :  { %2384 = vpow2.f32 %v1445_v63  ;;  %2257 = vmatprep.subr.mxu0 %v2493_v8 }
 0xa50   :  { %2255 = vmatmul.mubr.msk.f32.vlgmr.msra.gmra.mrb[6].mxu0 %vm166_vm2, %v972_v0 }
 0xa51   :  { %2259 = vmatprep.mubr.msk.f32.mxu0 %vm2494_vm1, %v2493_v8  ;;  %2258 = vmatpush3.msra.mxu0 %v2758_v3 }
 0xa52   :  { %2272 = vmatprep.subr.mxu0 %v2493_v8 }
 0xa58   :  { %v2385_v1 = vpop.eup %2384 }
 0xa59   :  { %v1447_v2 = vsel %vm166_vm2, %v2385_v1, 0.0 }
 0xa5a   :  { %1448 = vadd.xlane.f32.xlu1 %v1447_v2 }
 0xaa6   :  { %v1689_v57 = vpop.xlane.xlu1 %1688 }
 0xaa7   :  { %2386 = vrcp.f32 %v1689_v57 }
 0xaaa   :  { %v1693_v4 = vpop.permute.xlu1 %1692 }
 0xaab   :  { %2298 = vmatpush3.msra.mxu1 %v1693_v4 }
 0xaac   :  { %2307 = vmatprep.subr.mxu1 %v2493_v8 }
 0xab1   :  { %v2387_v5 = vpop.eup %2386 }
 0xab2   :  { %v1691_v6 = vmul.f32 %v2387_v5, %v2381_v50 }
 0xab4   :  { %2300 = vmatmul.mubr.msk.f32.vlgmr.msra.gmra.mrb[22].mxu1 %vm166_vm2, %v1691_v6 }
 0xab5   :  { %2308 = vmatpush3.xpose.msk.msra.mxu1 %vm166_vm2, %v1845_v54  ;;  %2309 = vmatprep.mubr.msk.f32.mxu1 %vm2494_vm1, %v2493_v8 }
 0xab8   :  { %2310 = vmatmul.mubr.msk.f32.vlgmr.msra.gmra.mrb[24].mxu1 %vm166_vm2, %v1843_v59 }
 0xae7   :  { %v1449_v7 = vpop.xlane.xlu1 %1448 }
 0xae8   :  { %2388 = vrcp.f32 %v1449_v7 }
 0xaf2   :  { %v2389_v13 = vpop.eup %2388 }
 0xaf3   :  { %v1451_v16 = vmul.f32 %v2389_v13, %v2385_v1 }
 0xb23   :  { %v1045_v11 = vpop.f32.mrb[6].mxu0 }
 0xb24   :  { %v2256_v12 = vpop.f32.mrb[7].mxu0  ;;  %2260 = vmatmul.mubr.msk.f32.vlgmr.msra.gmra.mrb[4].mxu0 %vm166_vm2, %v1045_v11 }
 0xb25   :  { %2273 = vmatpush3.msra.mxu0 %v2623_v29  ;;  %2274 = vmatprep.mubr.msk.f32.mxu0 %vm2494_vm1, %v2493_v8 }
 0xb26   :  { %2282 = vmatprep.subr.mxu0 %v2493_v8 }
 0xb28   :  { %2275 = vmatmul.mubr.msk.f32.vlgmr.msra.gmra.mrb[8].mxu0 %vm166_vm2, %v2716_v34 }
 0xb29   :  { %2283 = vmatpush3.msra.mxu0 %v1453_v14  ;;  %2284 = vmatprep.mubr.msk.f32.mxu0 %vm2494_vm1, %v2493_v8 }
 0xb2a   :  { %2287 = vmatprep.subr.mxu0 %v2493_v8 }
 0xb2c   :  { %2285 = vmatmul.mubr.msk.f32.vlgmr.msra.gmra.mrb[10].mxu0 %vm166_vm2, %v1451_v16 }
 0xb2d   :  { %2288 = vmatpush3.msra.mxu0 %v2733_v47  ;;  %2289 = vmatprep.mubr.msk.f32.mxu0 %vm2494_vm1, %v2493_v8 }
 0xb2e   :  { %2302 = vmatprep.subr.mxu0 %v2493_v8 }
 0xb87   :  { %v1764_v29 = vpop.f32.mrb[22].mxu1 }
 0xb88   :  { %v2301_v17 = vpop.f32.mrb[23].mxu1 }
 0xb8b   :  { %v1916_v18 = vpop.f32.mrb[24].mxu1 }
 0xb8c   :  { %v1920_v19 = vsel %vm2604_vm3, %v1916_v18, -inf  ;;  %v2311_v20 = vpop.f32.mrb[25].mxu1 }
 0xb8d   :  { %v1921_v21 = vsel %vm166_vm2, %v1920_v19, -inf }
 0xb8e   :  { %1922 = vmax.xlane.f32.xlu1 %v1921_v21 }
 0xbf7   :  { %v1118_v24 = vpop.f32.mrb[4].mxu0 }
 0xbf8   :  { %v2331_v25 = vadd.f32 %v1118_v24, %v402_v23  ;;  %v2261_v26 = vpop.f32.mrb[5].mxu0 }
 0xbfa   :  { %2082 = vst.msk [vmem:[#allocation8] sm:$0xff] %vm65_vm0, %v2331_v25 }
 0xbff   :  { %v1524_v27 = vpop.f32.mrb[10].mxu0 }
 0xc00   :  { %v2286_v28 = vpop.f32.mrb[11].mxu0  ;;  %2290 = vmatmul.mubr.msk.f32.vlgmr.msra.gmra.mrb[8].mxu0 %vm166_vm2, %v1524_v27 }
 0xc01   :  { %2303 = vmatpush3.msra.mxu0 %v2742_v55  ;;  %2304 = vmatprep.mubr.msk.f32.mxu0 %vm2494_vm1, %v2493_v8 }
 0xc02   :  { %2312 = vmatprep.subr.mxu0 %v2493_v8 }
 0xc08   :  { %2305 = vmatmul.mubr.msk.f32.vlgmr.msra.gmra.mrb[8].mxu0 %vm166_vm2, %v1764_v29 }
 0xc09   :  { %2314 = vmatprep.mubr.msk.f32.mxu0 %vm2494_vm1, %v2493_v8 }
 0xc1b   :  { %v1923_v15 = vpop.xlane.xlu1 %1922 }
 0xc1c   :  { %v1924_v36 = vsub.f32 %v1920_v19, %v1923_v15 }
 0xc1e   :  { %v1925_v30 = vmul.f32 1.442695, %v1924_v36 }
 0xc20   :  { %2390 = vpow2.f32 %v1925_v30 }
 0xc2a   :  { %v2391_v31 = vpop.eup %2390 }
 0xc2b   :  { %v1927_v32 = vsel %vm166_vm2, %v2391_v31, 0.0 }
 0xc2c   :  { %1928 = vadd.xlane.f32.xlu1 %v1927_v32 }
 0xc3d   :  { %1932 = vrot.lane.b32.xlu1 %v2592_v9, %s2505_s10 }
 0xcb9   :  { %v1929_v33 = vpop.xlane.xlu1 %1928 }
 0xcba   :  { %2392 = vrcp.f32 %v1929_v33 }
 0xcbd   :  { %v1933_v34 = vpop.permute.xlu1 %1932 }
 0xcbe   :  { %2313 = vmatpush3.msra.mxu0 %v1933_v34 }
 0xcbf   :  { %2317 = vmatprep.subr.mxu0 %v2493_v8 }
 0xcc4   :  { %v2393_v35 = vpop.eup %2392 }
 0xcc5   :  { %v1931_v37 = vmul.f32 %v2393_v35, %v2391_v31 }
 0xcc7   :  { %2315 = vmatmul.mubr.msk.f32.vlgmr.msra.gmra.mrb[12].mxu0 %vm166_vm2, %v1931_v37 }
 0xcc8   :  { %2318 = vmatpush3.msra.mxu0 %v2758_v3  ;;  %2319 = vmatprep.mubr.msk.f32.mxu0 %vm2494_vm1, %v2493_v8 }
 0xd9a   :  { %v2004_v38 = vpop.f32.mrb[12].mxu0 }
 0xd9b   :  { %v2316_v39 = vpop.f32.mrb[13].mxu0  ;;  %2320 = vmatmul.mubr.msk.f32.vlgmr.msra.gmra.mrb[8].mxu0 %vm166_vm2, %v2004_v38 }
 0xe6e   :  { %v2077_v9 = vpop.f32.mrb[8].mxu0 }
 0xe6f   :  { %v2332_v40 = vadd.f32 %v2104_v22, %v2077_v9  ;;  %v2321_v41 = vpop.f32.mrb[9].mxu0 }
 0xe71   :  { %2083 = vst.msk [vmem:[#allocation8 + $0x8] sm:$0xff] %vm65_vm0, %v2332_v40 }
 0xe72   :  { %2471 = shalt.err (!%p2468_p0)
}
 0xe73   :  { %s2472_s16 = scalar_lea.hbm %s2828_s4, 256 }
 0xe74   :  { %p2473_p1 = scmp.ne.s32.totalorder %s2828_s4, %s2472_s16  ;;  %p2476_p2 = scmp.lt.u32.totalorder %s2472_s16, %s2828_s4 }
 0xe76   :  { %p2478_p3 = pnand %p2476_p2, %p2473_p1 }
 0xe78   :  { %2481 = shalt.err (!%p2478_p3)
}
 0xe79   :  { %2095 = dma.vmem_to_hbm [thread:$0]  %s2090_s1, 256, %s2828_s4, [#allocation4], %s2490_s27, %s2490_s27, %s2491_s28  }
 0xe7a   :  { %2486 = dma.done.wait [#allocation4], 256  }
 0xe7b   :  { %2487 = vsyncadd [#allocation4], 4294967040 }
 0xe7c   :  { %2099 = vsyncpa [#allocation3], 1 }
 0xe7d   :  { %2100 = vsyncpa [#allocation6], 1 }
 0xe7e   :  { %2101 = vsyncpa [#allocation4], 1 }

</bundles_post_ra>
